<compile_context>
chip_gen: v6e
topology: v6e:2x2x1
jax: 0.10.0
libtpu: 0.0.40
codegen_flags: <defaults>
</compile_context>

<pallas_src>
import functools

import jax
import jax.numpy as jnp
from jax.experimental import pallas as pl
from jax.experimental.pallas import tpu as pltpu


def gru_linear_kernel(
    x_ref,       # (T*B, I)   time-major flattened inputs
    wi_ref,      # (I, 3H)    packed input->gate weights  [r | z | n]
    wh_ref,      # (H, 3H)    packed hidden->gate weights [r | z | n]
    bx_ref,      # (1, 3H)    [b_ir+b_hr | b_iz+b_hz | b_in]
    bhn_ref,     # (1, H)     b_hn (must stay inside r * (W_hn h + b_hn))
    wlin_ref,    # (H, O)     Linear weight (pre-transposed)
    blin_ref,    # (1, O)     Linear bias
    o_ref,       # (B, O)     output
    *, T, B, H,
):
    # --- Hoisted input projection: one MXU matmul covers all T timesteps. ---
    xp = (
        jnp.dot(x_ref[...], wi_ref[...], preferred_element_type=jnp.float32)
        + bx_ref[...]
    )  # (T*B, 3H)

    wh = wh_ref[...]      # (H, 3H)  -- loaded once, reused every step
    bhn = bhn_ref[...]    # (1, H)

    h = jnp.zeros((B, H), jnp.float32)

    # --- Fully unrolled recurrence: per step, one fused (B,H)@(H,3H) matmul
    #     plus elementwise gate math is the only work on the serial path. ---
    for t in range(T):
        gx = xp[t * B:(t + 1) * B, :]                                  # (B, 3H)
        gh = jnp.dot(h, wh, preferred_element_type=jnp.float32)        # (B, 3H)
        r = jax.nn.sigmoid(gx[:, 0:H] + gh[:, 0:H])
        z = jax.nn.sigmoid(gx[:, H:2 * H] + gh[:, H:2 * H])
        n = jnp.tanh(gx[:, 2 * H:3 * H] + r * (gh[:, 2 * H:3 * H] + bhn))
        h = (1.0 - z) * n + z * h

    # --- Final Linear on the last hidden state, fused into the same kernel. ---
    o_ref[...] = (
        jnp.dot(h, wlin_ref[...], preferred_element_type=jnp.float32)
        + blin_ref[...]
    )


@functools.partial(jax.jit, static_argnames=())
def multi_sensor_gru_forward(x, params):
    """x: (B, T, I) batch_first (PyTorch convention). Returns (B, O)."""
    B, T, I = x.shape
    H = params["wh"].shape[0]
    O = params["wlin"].shape[1]

    # Time-major flatten (~1 KiB copy, fused under jit) so each timestep's
    # (B, I) slab is a contiguous static slice inside the kernel.
    x_tm = jnp.transpose(x, (1, 0, 2)).reshape(T * B, I)

    kernel = functools.partial(gru_linear_kernel, T=T, B=B, H=H)
    vmem = pl.BlockSpec(memory_space=pltpu.MemorySpace.VMEM)

    return pl.pallas_call(
        kernel,
        out_shape=jax.ShapeDtypeStruct((B, O), jnp.float32),
        in_specs=[vmem] * 7,
        out_specs=vmem,
    )(
        x_tm,
        params["wi"], params["wh"],
        params["bx"], params["bhn"],
        params["wlin"], params["blin"],
    )


def init_params(key, input_size, hidden_size, output_size):
    """Deterministic init mirroring PyTorch GRU/Linear shapes, pre-packed.

    PyTorch stores W_ih (3H, I), W_hh (3H, H), b_ih (3H,), b_hh (3H,) with
    gate order [r, z, n]; Linear stores (O, H) and (O,).  We pre-transpose,
    concatenate the three gates along the output (lane) dim, pre-sum the r/z
    biases (b_i* + b_h*), and fold b_in into the packed input-side bias.  Only
    b_hn must stay separate (it sits inside r * (W_hn h + b_hn)).
    """
    H = hidden_size
    ks = jax.random.split(key, 6)
    bound = 1.0 / jnp.sqrt(H)
    w_ih = jax.random.uniform(ks[0], (3 * H, input_size),
                              minval=-bound, maxval=bound, dtype=jnp.float32)
    w_hh = jax.random.uniform(ks[1], (3 * H, H),
                              minval=-bound, maxval=bound, dtype=jnp.float32)
    b_ih = jax.random.uniform(ks[2], (3 * H,),
                              minval=-bound, maxval=bound, dtype=jnp.float32)
    b_hh = jax.random.uniform(ks[3], (3 * H,),
                              minval=-bound, maxval=bound, dtype=jnp.float32)
    w_lin = jax.random.uniform(ks[4], (output_size, H),
                               minval=-bound, maxval=bound, dtype=jnp.float32)
    b_lin = jax.random.uniform(ks[5], (output_size,),
                               minval=-bound, maxval=bound, dtype=jnp.float32)

    wi = jnp.concatenate(
        [w_ih[:H].T, w_ih[H:2 * H].T, w_ih[2 * H:].T], axis=1)   # (I, 3H)
    wh = jnp.concatenate(
        [w_hh[:H].T, w_hh[H:2 * H].T, w_hh[2 * H:].T], axis=1)   # (H, 3H)
    bx = jnp.concatenate(
        [b_ih[:H] + b_hh[:H],
         b_ih[H:2 * H] + b_hh[H:2 * H],
         b_ih[2 * H:]])[None, :]                                  # (1, 3H)
    bhn = b_hh[2 * H:][None, :]                                   # (1, H)

    return {
        "wi": wi, "wh": wh,
        "bx": bx, "bhn": bhn,
        "wlin": w_lin.T,            # (H, O)
        "blin": b_lin[None, :],     # (1, O)
    }


def reference_forward(x, params):
    """Pure-JAX reference of the same GRU + Linear (correctness check)."""
    B = x.shape[0]
    H = params["wh"].shape[0]
    wi, wh = params["wi"], params["wh"]
    bx, bhn = params["bx"][0], params["bhn"][0]

    def step(h, x_t):
        gx = x_t @ wi + bx
        gh = h @ wh
        r = jax.nn.sigmoid(gx[:, :H] + gh[:, :H])
        z = jax.nn.sigmoid(gx[:, H:2 * H] + gh[:, H:2 * H])
        n = jnp.tanh(gx[:, 2 * H:] + r * (gh[:, 2 * H:] + bhn))
        return (1.0 - z) * n + z * h, None

    h0 = jnp.zeros((B, H), jnp.float32)
    h_last, _ = jax.lax.scan(step, h0, jnp.transpose(x, (1, 0, 2)))
    return h_last @ params["wlin"] + params["blin"][0]


if __name__ == "__main__":
    # Shapes implied by the module: batch=2, seq=8, input_size=16,
    # hidden_layer_size=32, output_size=4.
    B, T, I, H, O = 2, 8, 16, 32, 4

    key = jax.random.PRNGKey(0)
    kx, kp = jax.random.split(key)
    x = jax.random.normal(kx, (B, T, I), dtype=jnp.float32)
    params = init_params(kp, I, H, O)

    out = jax.block_until_ready(multi_sensor_gru_forward(x, params))
    ref = reference_forward(x, params)

    assert out.shape == (B, O)
    assert jnp.allclose(out, ref, atol=1e-5, rtol=1e-5), "mismatch vs JAX reference"

    print("KERNEL_OK")
</pallas_src>

<mosaic_0001>
module attributes {stable_mosaic.version = 11 : i64} {
  func.func @gru_linear_kernel(%arg0: memref<16x16xf32, #tpu.memory_space<vmem>>, %arg1: memref<16x96xf32, #tpu.memory_space<vmem>>, %arg2: memref<32x96xf32, #tpu.memory_space<vmem>>, %arg3: memref<1x96xf32, #tpu.memory_space<vmem>>, %arg4: memref<1x32xf32, #tpu.memory_space<vmem>>, %arg5: memref<32x4xf32, #tpu.memory_space<vmem>>, %arg6: memref<1x4xf32, #tpu.memory_space<vmem>>, %arg7: memref<2x4xf32, #tpu.memory_space<vmem>>) attributes {dimension_semantics = [], scalar_prefetch = 0 : i64, scratch_operands = 0 : i64, tpu.core_type = #tpu.core_type<tc>} {
    %c0 = arith.constant 0 : index
    %c0_0 = arith.constant 0 : index
    %0 = vector.load %arg0[%c0, %c0_0] : memref<16x16xf32, #tpu.memory_space<vmem>>, vector<16x16xf32>
    %c0_1 = arith.constant 0 : index
    %c0_2 = arith.constant 0 : index
    %1 = vector.load %arg1[%c0_1, %c0_2] : memref<16x96xf32, #tpu.memory_space<vmem>>, vector<16x96xf32>
    %cst = arith.constant dense<0.000000e+00> : vector<16x96xf32>
    %2 = tpu.matmul %0, %1, %cst {dimension_numbers = #tpu.dot_dimension_numbers<[1], [0], [0], [1], [0, 0, 1, 1], [], []>} : vector<16x16xf32>, vector<16x96xf32>, vector<16x96xf32> -> vector<16x96xf32>
    %c0_3 = arith.constant 0 : index
    %c0_4 = arith.constant 0 : index
    %3 = vector.load %arg3[%c0_3, %c0_4] : memref<1x96xf32, #tpu.memory_space<vmem>>, vector<1x96xf32>
    %4 = vector.broadcast %3 : vector<1x96xf32> to vector<16x96xf32>
    %5 = arith.addf %2, %4 : vector<16x96xf32>
    %c0_5 = arith.constant 0 : index
    %c0_6 = arith.constant 0 : index
    %6 = vector.load %arg2[%c0_5, %c0_6] : memref<32x96xf32, #tpu.memory_space<vmem>>, vector<32x96xf32>
    %c0_7 = arith.constant 0 : index
    %c0_8 = arith.constant 0 : index
    %7 = vector.load %arg4[%c0_7, %c0_8] : memref<1x32xf32, #tpu.memory_space<vmem>>, vector<1x32xf32>
    %cst_9 = arith.constant 0.000000e+00 : f32
    %8 = vector.broadcast %cst_9 : f32 to vector<2x32xf32>
    %9 = vector.extract_strided_slice %5 {offsets = [0, 0], sizes = [2, 96], strides = [1, 1]} : vector<16x96xf32> to vector<2x96xf32>
    %cst_10 = arith.constant dense<0.000000e+00> : vector<2x96xf32>
    %10 = tpu.matmul %8, %6, %cst_10 {dimension_numbers = #tpu.dot_dimension_numbers<[1], [0], [0], [1], [0, 0, 1, 1], [], []>} : vector<2x32xf32>, vector<32x96xf32>, vector<2x96xf32> -> vector<2x96xf32>
    %11 = vector.extract_strided_slice %9 {offsets = [0, 0], sizes = [2, 32], strides = [1, 1]} : vector<2x96xf32> to vector<2x32xf32>
    %12 = vector.extract_strided_slice %10 {offsets = [0, 0], sizes = [2, 32], strides = [1, 1]} : vector<2x96xf32> to vector<2x32xf32>
    %13 = arith.addf %11, %12 : vector<2x32xf32>
    %14 = arith.negf %13 : vector<2x32xf32>
    %15 = math.exp %14 : vector<2x32xf32>
    %cst_11 = arith.constant 1.000000e+00 : f32
    %16 = vector.broadcast %cst_11 : f32 to vector<2x32xf32>
    %17 = arith.addf %16, %15 : vector<2x32xf32>
    %18 = arith.divf %16, %17 : vector<2x32xf32>
    %19 = vector.extract_strided_slice %9 {offsets = [0, 32], sizes = [2, 32], strides = [1, 1]} : vector<2x96xf32> to vector<2x32xf32>
    %20 = vector.extract_strided_slice %10 {offsets = [0, 32], sizes = [2, 32], strides = [1, 1]} : vector<2x96xf32> to vector<2x32xf32>
    %21 = arith.addf %19, %20 : vector<2x32xf32>
    %22 = arith.negf %21 : vector<2x32xf32>
    %23 = math.exp %22 : vector<2x32xf32>
    %cst_12 = arith.constant 1.000000e+00 : f32
    %24 = vector.broadcast %cst_12 : f32 to vector<2x32xf32>
    %25 = arith.addf %24, %23 : vector<2x32xf32>
    %26 = arith.divf %24, %25 : vector<2x32xf32>
    %27 = vector.extract_strided_slice %9 {offsets = [0, 64], sizes = [2, 32], strides = [1, 1]} : vector<2x96xf32> to vector<2x32xf32>
    %28 = vector.extract_strided_slice %10 {offsets = [0, 64], sizes = [2, 32], strides = [1, 1]} : vector<2x96xf32> to vector<2x32xf32>
    %29 = vector.broadcast %7 : vector<1x32xf32> to vector<2x32xf32>
    %30 = arith.addf %28, %29 : vector<2x32xf32>
    %31 = arith.mulf %18, %30 : vector<2x32xf32>
    %32 = arith.addf %27, %31 : vector<2x32xf32>
    %33 = math.tanh %32 : vector<2x32xf32>
    %cst_13 = arith.constant 1.000000e+00 : f32
    %34 = vector.broadcast %cst_13 : f32 to vector<2x32xf32>
    %35 = arith.subf %34, %26 : vector<2x32xf32>
    %36 = arith.mulf %35, %33 : vector<2x32xf32>
    %37 = arith.mulf %26, %8 : vector<2x32xf32>
    %38 = arith.addf %36, %37 : vector<2x32xf32>
    %39 = vector.extract_strided_slice %5 {offsets = [2, 0], sizes = [2, 96], strides = [1, 1]} : vector<16x96xf32> to vector<2x96xf32>
    %cst_14 = arith.constant dense<0.000000e+00> : vector<2x96xf32>
    %40 = tpu.matmul %38, %6, %cst_14 {dimension_numbers = #tpu.dot_dimension_numbers<[1], [0], [0], [1], [0, 0, 1, 1], [], []>} : vector<2x32xf32>, vector<32x96xf32>, vector<2x96xf32> -> vector<2x96xf32>
    %41 = vector.extract_strided_slice %39 {offsets = [0, 0], sizes = [2, 32], strides = [1, 1]} : vector<2x96xf32> to vector<2x32xf32>
    %42 = vector.extract_strided_slice %40 {offsets = [0, 0], sizes = [2, 32], strides = [1, 1]} : vector<2x96xf32> to vector<2x32xf32>
    %43 = arith.addf %41, %42 : vector<2x32xf32>
    %44 = arith.negf %43 : vector<2x32xf32>
    %45 = math.exp %44 : vector<2x32xf32>
    %cst_15 = arith.constant 1.000000e+00 : f32
    %46 = vector.broadcast %cst_15 : f32 to vector<2x32xf32>
    %47 = arith.addf %46, %45 : vector<2x32xf32>
    %48 = arith.divf %46, %47 : vector<2x32xf32>
    %49 = vector.extract_strided_slice %39 {offsets = [0, 32], sizes = [2, 32], strides = [1, 1]} : vector<2x96xf32> to vector<2x32xf32>
    %50 = vector.extract_strided_slice %40 {offsets = [0, 32], sizes = [2, 32], strides = [1, 1]} : vector<2x96xf32> to vector<2x32xf32>
    %51 = arith.addf %49, %50 : vector<2x32xf32>
    %52 = arith.negf %51 : vector<2x32xf32>
    %53 = math.exp %52 : vector<2x32xf32>
    %cst_16 = arith.constant 1.000000e+00 : f32
    %54 = vector.broadcast %cst_16 : f32 to vector<2x32xf32>
    %55 = arith.addf %54, %53 : vector<2x32xf32>
    %56 = arith.divf %54, %55 : vector<2x32xf32>
    %57 = vector.extract_strided_slice %39 {offsets = [0, 64], sizes = [2, 32], strides = [1, 1]} : vector<2x96xf32> to vector<2x32xf32>
    %58 = vector.extract_strided_slice %40 {offsets = [0, 64], sizes = [2, 32], strides = [1, 1]} : vector<2x96xf32> to vector<2x32xf32>
    %59 = vector.broadcast %7 : vector<1x32xf32> to vector<2x32xf32>
    %60 = arith.addf %58, %59 : vector<2x32xf32>
    %61 = arith.mulf %48, %60 : vector<2x32xf32>
    %62 = arith.addf %57, %61 : vector<2x32xf32>
    %63 = math.tanh %62 : vector<2x32xf32>
    %cst_17 = arith.constant 1.000000e+00 : f32
    %64 = vector.broadcast %cst_17 : f32 to vector<2x32xf32>
    %65 = arith.subf %64, %56 : vector<2x32xf32>
    %66 = arith.mulf %65, %63 : vector<2x32xf32>
    %67 = arith.mulf %56, %38 : vector<2x32xf32>
    %68 = arith.addf %66, %67 : vector<2x32xf32>
    %69 = vector.extract_strided_slice %5 {offsets = [4, 0], sizes = [2, 96], strides = [1, 1]} : vector<16x96xf32> to vector<2x96xf32>
    %cst_18 = arith.constant dense<0.000000e+00> : vector<2x96xf32>
    %70 = tpu.matmul %68, %6, %cst_18 {dimension_numbers = #tpu.dot_dimension_numbers<[1], [0], [0], [1], [0, 0, 1, 1], [], []>} : vector<2x32xf32>, vector<32x96xf32>, vector<2x96xf32> -> vector<2x96xf32>
    %71 = vector.extract_strided_slice %69 {offsets = [0, 0], sizes = [2, 32], strides = [1, 1]} : vector<2x96xf32> to vector<2x32xf32>
    %72 = vector.extract_strided_slice %70 {offsets = [0, 0], sizes = [2, 32], strides = [1, 1]} : vector<2x96xf32> to vector<2x32xf32>
    %73 = arith.addf %71, %72 : vector<2x32xf32>
    %74 = arith.negf %73 : vector<2x32xf32>
    %75 = math.exp %74 : vector<2x32xf32>
    %cst_19 = arith.constant 1.000000e+00 : f32
    %76 = vector.broadcast %cst_19 : f32 to vector<2x32xf32>
    %77 = arith.addf %76, %75 : vector<2x32xf32>
    %78 = arith.divf %76, %77 : vector<2x32xf32>
    %79 = vector.extract_strided_slice %69 {offsets = [0, 32], sizes = [2, 32], strides = [1, 1]} : vector<2x96xf32> to vector<2x32xf32>
    %80 = vector.extract_strided_slice %70 {offsets = [0, 32], sizes = [2, 32], strides = [1, 1]} : vector<2x96xf32> to vector<2x32xf32>
    %81 = arith.addf %79, %80 : vector<2x32xf32>
    %82 = arith.negf %81 : vector<2x32xf32>
    %83 = math.exp %82 : vector<2x32xf32>
    %cst_20 = arith.constant 1.000000e+00 : f32
    %84 = vector.broadcast %cst_20 : f32 to vector<2x32xf32>
    %85 = arith.addf %84, %83 : vector<2x32xf32>
    %86 = arith.divf %84, %85 : vector<2x32xf32>
    %87 = vector.extract_strided_slice %69 {offsets = [0, 64], sizes = [2, 32], strides = [1, 1]} : vector<2x96xf32> to vector<2x32xf32>
    %88 = vector.extract_strided_slice %70 {offsets = [0, 64], sizes = [2, 32], strides = [1, 1]} : vector<2x96xf32> to vector<2x32xf32>
    %89 = vector.broadcast %7 : vector<1x32xf32> to vector<2x32xf32>
    %90 = arith.addf %88, %89 : vector<2x32xf32>
    %91 = arith.mulf %78, %90 : vector<2x32xf32>
    %92 = arith.addf %87, %91 : vector<2x32xf32>
    %93 = math.tanh %92 : vector<2x32xf32>
    %cst_21 = arith.constant 1.000000e+00 : f32
    %94 = vector.broadcast %cst_21 : f32 to vector<2x32xf32>
    %95 = arith.subf %94, %86 : vector<2x32xf32>
    %96 = arith.mulf %95, %93 : vector<2x32xf32>
    %97 = arith.mulf %86, %68 : vector<2x32xf32>
    %98 = arith.addf %96, %97 : vector<2x32xf32>
    %99 = vector.extract_strided_slice %5 {offsets = [6, 0], sizes = [2, 96], strides = [1, 1]} : vector<16x96xf32> to vector<2x96xf32>
    %cst_22 = arith.constant dense<0.000000e+00> : vector<2x96xf32>
    %100 = tpu.matmul %98, %6, %cst_22 {dimension_numbers = #tpu.dot_dimension_numbers<[1], [0], [0], [1], [0, 0, 1, 1], [], []>} : vector<2x32xf32>, vector<32x96xf32>, vector<2x96xf32> -> vector<2x96xf32>
    %101 = vector.extract_strided_slice %99 {offsets = [0, 0], sizes = [2, 32], strides = [1, 1]} : vector<2x96xf32> to vector<2x32xf32>
    %102 = vector.extract_strided_slice %100 {offsets = [0, 0], sizes = [2, 32], strides = [1, 1]} : vector<2x96xf32> to vector<2x32xf32>
    %103 = arith.addf %101, %102 : vector<2x32xf32>
    %104 = arith.negf %103 : vector<2x32xf32>
    %105 = math.exp %104 : vector<2x32xf32>
    %cst_23 = arith.constant 1.000000e+00 : f32
    %106 = vector.broadcast %cst_23 : f32 to vector<2x32xf32>
    %107 = arith.addf %106, %105 : vector<2x32xf32>
    %108 = arith.divf %106, %107 : vector<2x32xf32>
    %109 = vector.extract_strided_slice %99 {offsets = [0, 32], sizes = [2, 32], strides = [1, 1]} : vector<2x96xf32> to vector<2x32xf32>
    %110 = vector.extract_strided_slice %100 {offsets = [0, 32], sizes = [2, 32], strides = [1, 1]} : vector<2x96xf32> to vector<2x32xf32>
    %111 = arith.addf %109, %110 : vector<2x32xf32>
    %112 = arith.negf %111 : vector<2x32xf32>
    %113 = math.exp %112 : vector<2x32xf32>
    %cst_24 = arith.constant 1.000000e+00 : f32
    %114 = vector.broadcast %cst_24 : f32 to vector<2x32xf32>
    %115 = arith.addf %114, %113 : vector<2x32xf32>
    %116 = arith.divf %114, %115 : vector<2x32xf32>
    %117 = vector.extract_strided_slice %99 {offsets = [0, 64], sizes = [2, 32], strides = [1, 1]} : vector<2x96xf32> to vector<2x32xf32>
    %118 = vector.extract_strided_slice %100 {offsets = [0, 64], sizes = [2, 32], strides = [1, 1]} : vector<2x96xf32> to vector<2x32xf32>
    %119 = vector.broadcast %7 : vector<1x32xf32> to vector<2x32xf32>
    %120 = arith.addf %118, %119 : vector<2x32xf32>
    %121 = arith.mulf %108, %120 : vector<2x32xf32>
    %122 = arith.addf %117, %121 : vector<2x32xf32>
    %123 = math.tanh %122 : vector<2x32xf32>
    %cst_25 = arith.constant 1.000000e+00 : f32
    %124 = vector.broadcast %cst_25 : f32 to vector<2x32xf32>
    %125 = arith.subf %124, %116 : vector<2x32xf32>
    %126 = arith.mulf %125, %123 : vector<2x32xf32>
    %127 = arith.mulf %116, %98 : vector<2x32xf32>
    %128 = arith.addf %126, %127 : vector<2x32xf32>
    %129 = vector.extract_strided_slice %5 {offsets = [8, 0], sizes = [2, 96], strides = [1, 1]} : vector<16x96xf32> to vector<2x96xf32>
    %cst_26 = arith.constant dense<0.000000e+00> : vector<2x96xf32>
    %130 = tpu.matmul %128, %6, %cst_26 {dimension_numbers = #tpu.dot_dimension_numbers<[1], [0], [0], [1], [0, 0, 1, 1], [], []>} : vector<2x32xf32>, vector<32x96xf32>, vector<2x96xf32> -> vector<2x96xf32>
    %131 = vector.extract_strided_slice %129 {offsets = [0, 0], sizes = [2, 32], strides = [1, 1]} : vector<2x96xf32> to vector<2x32xf32>
    %132 = vector.extract_strided_slice %130 {offsets = [0, 0], sizes = [2, 32], strides = [1, 1]} : vector<2x96xf32> to vector<2x32xf32>
    %133 = arith.addf %131, %132 : vector<2x32xf32>
    %134 = arith.negf %133 : vector<2x32xf32>
    %135 = math.exp %134 : vector<2x32xf32>
    %cst_27 = arith.constant 1.000000e+00 : f32
    %136 = vector.broadcast %cst_27 : f32 to vector<2x32xf32>
    %137 = arith.addf %136, %135 : vector<2x32xf32>
    %138 = arith.divf %136, %137 : vector<2x32xf32>
    %139 = vector.extract_strided_slice %129 {offsets = [0, 32], sizes = [2, 32], strides = [1, 1]} : vector<2x96xf32> to vector<2x32xf32>
    %140 = vector.extract_strided_slice %130 {offsets = [0, 32], sizes = [2, 32], strides = [1, 1]} : vector<2x96xf32> to vector<2x32xf32>
    %141 = arith.addf %139, %140 : vector<2x32xf32>
    %142 = arith.negf %141 : vector<2x32xf32>
    %143 = math.exp %142 : vector<2x32xf32>
    %cst_28 = arith.constant 1.000000e+00 : f32
    %144 = vector.broadcast %cst_28 : f32 to vector<2x32xf32>
    %145 = arith.addf %144, %143 : vector<2x32xf32>
    %146 = arith.divf %144, %145 : vector<2x32xf32>
    %147 = vector.extract_strided_slice %129 {offsets = [0, 64], sizes = [2, 32], strides = [1, 1]} : vector<2x96xf32> to vector<2x32xf32>
    %148 = vector.extract_strided_slice %130 {offsets = [0, 64], sizes = [2, 32], strides = [1, 1]} : vector<2x96xf32> to vector<2x32xf32>
    %149 = vector.broadcast %7 : vector<1x32xf32> to vector<2x32xf32>
    %150 = arith.addf %148, %149 : vector<2x32xf32>
    %151 = arith.mulf %138, %150 : vector<2x32xf32>
    %152 = arith.addf %147, %151 : vector<2x32xf32>
    %153 = math.tanh %152 : vector<2x32xf32>
    %cst_29 = arith.constant 1.000000e+00 : f32
    %154 = vector.broadcast %cst_29 : f32 to vector<2x32xf32>
    %155 = arith.subf %154, %146 : vector<2x32xf32>
    %156 = arith.mulf %155, %153 : vector<2x32xf32>
    %157 = arith.mulf %146, %128 : vector<2x32xf32>
    %158 = arith.addf %156, %157 : vector<2x32xf32>
    %159 = vector.extract_strided_slice %5 {offsets = [10, 0], sizes = [2, 96], strides = [1, 1]} : vector<16x96xf32> to vector<2x96xf32>
    %cst_30 = arith.constant dense<0.000000e+00> : vector<2x96xf32>
    %160 = tpu.matmul %158, %6, %cst_30 {dimension_numbers = #tpu.dot_dimension_numbers<[1], [0], [0], [1], [0, 0, 1, 1], [], []>} : vector<2x32xf32>, vector<32x96xf32>, vector<2x96xf32> -> vector<2x96xf32>
    %161 = vector.extract_strided_slice %159 {offsets = [0, 0], sizes = [2, 32], strides = [1, 1]} : vector<2x96xf32> to vector<2x32xf32>
    %162 = vector.extract_strided_slice %160 {offsets = [0, 0], sizes = [2, 32], strides = [1, 1]} : vector<2x96xf32> to vector<2x32xf32>
    %163 = arith.addf %161, %162 : vector<2x32xf32>
    %164 = arith.negf %163 : vector<2x32xf32>
    %165 = math.exp %164 : vector<2x32xf32>
    %cst_31 = arith.constant 1.000000e+00 : f32
    %166 = vector.broadcast %cst_31 : f32 to vector<2x32xf32>
    %167 = arith.addf %166, %165 : vector<2x32xf32>
    %168 = arith.divf %166, %167 : vector<2x32xf32>
    %169 = vector.extract_strided_slice %159 {offsets = [0, 32], sizes = [2, 32], strides = [1, 1]} : vector<2x96xf32> to vector<2x32xf32>
    %170 = vector.extract_strided_slice %160 {offsets = [0, 32], sizes = [2, 32], strides = [1, 1]} : vector<2x96xf32> to vector<2x32xf32>
    %171 = arith.addf %169, %170 : vector<2x32xf32>
    %172 = arith.negf %171 : vector<2x32xf32>
    %173 = math.exp %172 : vector<2x32xf32>
    %cst_32 = arith.constant 1.000000e+00 : f32
    %174 = vector.broadcast %cst_32 : f32 to vector<2x32xf32>
    %175 = arith.addf %174, %173 : vector<2x32xf32>
    %176 = arith.divf %174, %175 : vector<2x32xf32>
    %177 = vector.extract_strided_slice %159 {offsets = [0, 64], sizes = [2, 32], strides = [1, 1]} : vector<2x96xf32> to vector<2x32xf32>
    %178 = vector.extract_strided_slice %160 {offsets = [0, 64], sizes = [2, 32], strides = [1, 1]} : vector<2x96xf32> to vector<2x32xf32>
    %179 = vector.broadcast %7 : vector<1x32xf32> to vector<2x32xf32>
    %180 = arith.addf %178, %179 : vector<2x32xf32>
    %181 = arith.mulf %168, %180 : vector<2x32xf32>
    %182 = arith.addf %177, %181 : vector<2x32xf32>
    %183 = math.tanh %182 : vector<2x32xf32>
    %cst_33 = arith.constant 1.000000e+00 : f32
    %184 = vector.broadcast %cst_33 : f32 to vector<2x32xf32>
    %185 = arith.subf %184, %176 : vector<2x32xf32>
    %186 = arith.mulf %185, %183 : vector<2x32xf32>
    %187 = arith.mulf %176, %158 : vector<2x32xf32>
    %188 = arith.addf %186, %187 : vector<2x32xf32>
    %189 = vector.extract_strided_slice %5 {offsets = [12, 0], sizes = [2, 96], strides = [1, 1]} : vector<16x96xf32> to vector<2x96xf32>
    %cst_34 = arith.constant dense<0.000000e+00> : vector<2x96xf32>
    %190 = tpu.matmul %188, %6, %cst_34 {dimension_numbers = #tpu.dot_dimension_numbers<[1], [0], [0], [1], [0, 0, 1, 1], [], []>} : vector<2x32xf32>, vector<32x96xf32>, vector<2x96xf32> -> vector<2x96xf32>
    %191 = vector.extract_strided_slice %189 {offsets = [0, 0], sizes = [2, 32], strides = [1, 1]} : vector<2x96xf32> to vector<2x32xf32>
    %192 = vector.extract_strided_slice %190 {offsets = [0, 0], sizes = [2, 32], strides = [1, 1]} : vector<2x96xf32> to vector<2x32xf32>
    %193 = arith.addf %191, %192 : vector<2x32xf32>
    %194 = arith.negf %193 : vector<2x32xf32>
    %195 = math.exp %194 : vector<2x32xf32>
    %cst_35 = arith.constant 1.000000e+00 : f32
    %196 = vector.broadcast %cst_35 : f32 to vector<2x32xf32>
    %197 = arith.addf %196, %195 : vector<2x32xf32>
    %198 = arith.divf %196, %197 : vector<2x32xf32>
    %199 = vector.extract_strided_slice %189 {offsets = [0, 32], sizes = [2, 32], strides = [1, 1]} : vector<2x96xf32> to vector<2x32xf32>
    %200 = vector.extract_strided_slice %190 {offsets = [0, 32], sizes = [2, 32], strides = [1, 1]} : vector<2x96xf32> to vector<2x32xf32>
    %201 = arith.addf %199, %200 : vector<2x32xf32>
    %202 = arith.negf %201 : vector<2x32xf32>
    %203 = math.exp %202 : vector<2x32xf32>
    %cst_36 = arith.constant 1.000000e+00 : f32
    %204 = vector.broadcast %cst_36 : f32 to vector<2x32xf32>
    %205 = arith.addf %204, %203 : vector<2x32xf32>
    %206 = arith.divf %204, %205 : vector<2x32xf32>
    %207 = vector.extract_strided_slice %189 {offsets = [0, 64], sizes = [2, 32], strides = [1, 1]} : vector<2x96xf32> to vector<2x32xf32>
    %208 = vector.extract_strided_slice %190 {offsets = [0, 64], sizes = [2, 32], strides = [1, 1]} : vector<2x96xf32> to vector<2x32xf32>
    %209 = vector.broadcast %7 : vector<1x32xf32> to vector<2x32xf32>
    %210 = arith.addf %208, %209 : vector<2x32xf32>
    %211 = arith.mulf %198, %210 : vector<2x32xf32>
    %212 = arith.addf %207, %211 : vector<2x32xf32>
    %213 = math.tanh %212 : vector<2x32xf32>
    %cst_37 = arith.constant 1.000000e+00 : f32
    %214 = vector.broadcast %cst_37 : f32 to vector<2x32xf32>
    %215 = arith.subf %214, %206 : vector<2x32xf32>
    %216 = arith.mulf %215, %213 : vector<2x32xf32>
    %217 = arith.mulf %206, %188 : vector<2x32xf32>
    %218 = arith.addf %216, %217 : vector<2x32xf32>
    %219 = vector.extract_strided_slice %5 {offsets = [14, 0], sizes = [2, 96], strides = [1, 1]} : vector<16x96xf32> to vector<2x96xf32>
    %cst_38 = arith.constant dense<0.000000e+00> : vector<2x96xf32>
    %220 = tpu.matmul %218, %6, %cst_38 {dimension_numbers = #tpu.dot_dimension_numbers<[1], [0], [0], [1], [0, 0, 1, 1], [], []>} : vector<2x32xf32>, vector<32x96xf32>, vector<2x96xf32> -> vector<2x96xf32>
    %221 = vector.extract_strided_slice %219 {offsets = [0, 0], sizes = [2, 32], strides = [1, 1]} : vector<2x96xf32> to vector<2x32xf32>
    %222 = vector.extract_strided_slice %220 {offsets = [0, 0], sizes = [2, 32], strides = [1, 1]} : vector<2x96xf32> to vector<2x32xf32>
    %223 = arith.addf %221, %222 : vector<2x32xf32>
    %224 = arith.negf %223 : vector<2x32xf32>
    %225 = math.exp %224 : vector<2x32xf32>
    %cst_39 = arith.constant 1.000000e+00 : f32
    %226 = vector.broadcast %cst_39 : f32 to vector<2x32xf32>
    %227 = arith.addf %226, %225 : vector<2x32xf32>
    %228 = arith.divf %226, %227 : vector<2x32xf32>
    %229 = vector.extract_strided_slice %219 {offsets = [0, 32], sizes = [2, 32], strides = [1, 1]} : vector<2x96xf32> to vector<2x32xf32>
    %230 = vector.extract_strided_slice %220 {offsets = [0, 32], sizes = [2, 32], strides = [1, 1]} : vector<2x96xf32> to vector<2x32xf32>
    %231 = arith.addf %229, %230 : vector<2x32xf32>
    %232 = arith.negf %231 : vector<2x32xf32>
    %233 = math.exp %232 : vector<2x32xf32>
    %cst_40 = arith.constant 1.000000e+00 : f32
    %234 = vector.broadcast %cst_40 : f32 to vector<2x32xf32>
    %235 = arith.addf %234, %233 : vector<2x32xf32>
    %236 = arith.divf %234, %235 : vector<2x32xf32>
    %237 = vector.extract_strided_slice %219 {offsets = [0, 64], sizes = [2, 32], strides = [1, 1]} : vector<2x96xf32> to vector<2x32xf32>
    %238 = vector.extract_strided_slice %220 {offsets = [0, 64], sizes = [2, 32], strides = [1, 1]} : vector<2x96xf32> to vector<2x32xf32>
    %239 = vector.broadcast %7 : vector<1x32xf32> to vector<2x32xf32>
    %240 = arith.addf %238, %239 : vector<2x32xf32>
    %241 = arith.mulf %228, %240 : vector<2x32xf32>
    %242 = arith.addf %237, %241 : vector<2x32xf32>
    %243 = math.tanh %242 : vector<2x32xf32>
    %cst_41 = arith.constant 1.000000e+00 : f32
    %244 = vector.broadcast %cst_41 : f32 to vector<2x32xf32>
    %245 = arith.subf %244, %236 : vector<2x32xf32>
    %246 = arith.mulf %245, %243 : vector<2x32xf32>
    %247 = arith.mulf %236, %218 : vector<2x32xf32>
    %248 = arith.addf %246, %247 : vector<2x32xf32>
    %c0_42 = arith.constant 0 : index
    %c0_43 = arith.constant 0 : index
    %249 = vector.load %arg5[%c0_42, %c0_43] : memref<32x4xf32, #tpu.memory_space<vmem>>, vector<32x4xf32>
    %cst_44 = arith.constant dense<0.000000e+00> : vector<2x4xf32>
    %250 = tpu.matmul %248, %249, %cst_44 {dimension_numbers = #tpu.dot_dimension_numbers<[1], [0], [0], [1], [0, 0, 1, 1], [], []>} : vector<2x32xf32>, vector<32x4xf32>, vector<2x4xf32> -> vector<2x4xf32>
    %c0_45 = arith.constant 0 : index
    %c0_46 = arith.constant 0 : index
    %251 = vector.load %arg6[%c0_45, %c0_46] : memref<1x4xf32, #tpu.memory_space<vmem>>, vector<1x4xf32>
    %252 = vector.broadcast %251 : vector<1x4xf32> to vector<2x4xf32>
    %253 = arith.addf %250, %252 : vector<2x4xf32>
    %c0_47 = arith.constant 0 : index
    %c0_48 = arith.constant 0 : index
    %254 = vector.load %arg7[%c0_47, %c0_48] : memref<2x4xf32, #tpu.memory_space<vmem>>, vector<2x4xf32>
    tpu.vector_store %arg7[%c0_47, %c0_48], %253 {strides = array<i32>} : memref<2x4xf32, #tpu.memory_space<vmem>>, vector<2x4xf32>,
    return
  }
}

</mosaic_0001>

<bundles_post_ra>
// kernel: multi_sensor_gru_forward.1
= control target key start
LH: loop header
LB: loop body
LE: loop exit
PB: predicated region body
PF: predicated region fallthrough
CT: control target
= control target key end

     0   :  { %v1344_v3 = vmov 0.0   ;;  %vm38_vm0 = vcmask 130048   ;;  %s1603_s0 = inlined_call_operand.vmem [shape: f32[16,16], index: 0, kind: input, shape index: {}]   ;;  %s1604_s1 = inlined_call_operand.vmem [shape: f32[16,96], index: 1, kind: input, shape index: {}]   ;;  %s1605_s2 = inlined_call_operand.vmem [shape: f32[32,96], index: 2, kind: input, shape index: {}]   ;;  %s1606_s3 = inlined_call_operand.vmem [shape: f32[1,96], index: 3, kind: input, shape index: {}]   ;;  %s1607_s4 = inlined_call_operand.vmem [shape: f32[1,32], index: 4, kind: input, shape index: {}]   ;;  %s1608_s5 = inlined_call_operand.vmem [shape: f32[32,4], index: 5, kind: input, shape index: {}]   ;;  %s1609_s6 = inlined_call_operand.vmem [shape: f32[1,4], index: 6, kind: input, shape index: {}]   ;;  %s1610_s7 = inlined_call_operand.hbm [shape: f32[2,4], index: 7, kind: output, shape index: {}]  }
   0x1   :  { %v30_v0 = vld [vmem:[%s1604_s1 + $0x8] sm:$0xff]  ;;  %v1395_v1 = vld [vmem:[%s1605_s2 + $0x18] sm:$0xff]  ;;  %v29_v2 = vld [vmem:[%s1604_s1] sm:$0xff]  ;;  %1170 = vmatprep.subr.mxu1 %v1344_v3 }
   0x2   :  { %1163 = vmatprep.subr.mxu0 %v30_v0  ;;  %v27_v4 = vld [vmem:[%s1603_s0] sm:$0xff]  ;;  %1171 = vmatpush3.msra.mxu1 %v1395_v1  ;;  %v1408_v5 = vld [vmem:[%s1605_s2 + $0x10] sm:$0xff]  ;;  %v28_v6 = vld [vmem:[%s1603_s0 + $0x8] sm:$0xff] }
   0x3   :  { %1164 = vmatpush3.msra.mxu0 %v30_v0  ;;  %1172 = vmatprep.subr.mxu1 %v1344_v3 }
   0x4   :  { %1165 = vmatprep.subr.mxu0 %v29_v2 }
   0x5   :  { %12 = vsyncpa [#allocation3], 0  ;;  %1166 = vmatpush3.msra.mxu0 %v29_v2  ;;  %1167 = vmatprep.mubr.msk.f32.mxu0 %vm38_vm0, %v27_v4  ;;  %v1417_v7 = vld [vmem:[%s1605_s2 + $0x8] sm:$0xff]  ;;  %v1097_v8 = vld [vmem:[%s1607_s4] ss:$0 sm:$0xff]  ;;  %vm1345_vm1 = vmmov 0  }
   0x6   :  { %1173 = vmatpush3.msra.mxu1 %v1408_v5  ;;  %1168 = vmatmul.mubr.msk.f32.vlgmr.msra.gmra.mxu0 %vm38_vm0, %v28_v6  ;;  %v1427_v9 = vld [vmem:[%s1605_s2] sm:$0xff]  ;;  %s1346_s17 = smov 64   ;;  %vm125_vm2 = vcmask 261120   ;;  %s1348_s27 = smov [#allocation2]   ;;  %vm1077_vm3 = vcmask 25600  }
   0x7   :  { %1174 = vmatprep.subr.mxu1 %v1344_v3  ;;  %1178 = vmatprep.mubr.msk.f32.mxu1 %vm1345_vm1, %v1344_v3  ;;  %v1093_v11 = vld [vmem:[%s1606_s3] ss:$0 sm:$0xff]  ;;  %s1347_s3 = smov 96   ;;  %s1085_s28 = sshll.u32 %s1348_s27, 4  ;;  %s1086_s28 = int_to_ptr.vmem [resolvable:$true] %s1085_s28 }
   0x8   :  { %1175 = vmatpush3.msra.mxu1 %v1417_v7  ;;  %211 = vrot.lane.b32.xlu0 %v1097_v8, %s1346_s17  ;;  %s1322_s29 = scalar_lea.vmem %s1086_s28, 32  ;;  %p1327_p1 = scmp.lt.s32.totalorder %s1086_s28, %s1086_s28 }
   0x9   :  { %1176 = vmatprep.subr.mxu1 %v1344_v3  ;;  %1181 = vmatprep.subr.mxu0 %v1344_v3  ;;  %p1323_p0 = scmp.ne.s32.totalorder %s1086_s28, %s1322_s29  ;;  %p1328_p2 = scmp.lt.s32.totalorder %s1322_s29, %s1322_s29 }
   0xa   :  { %1177 = vmatpush3.msra.mxu1 %v1427_v9  ;;  %1182 = vmatpush3.msra.mxu0 %v1395_v1 }
   0xb   :  { %1179 = vmatmul.mubr.f32.vlgmr.msra.gmra.mxu1 %v1344_v3  ;;  %1183 = vmatprep.subr.mxu0 %v1344_v3  ;;  %p1329_p3 = por %p1328_p2, %p1327_p1 }
   0xc   :  { %1184 = vmatpush3.msra.mxu0 %v1408_v5  ;;  %1189 = vmatprep.mubr.msk.f32.mxu0 %vm1345_vm1, %v1344_v3 }
   0xd   :  { %1185 = vmatprep.subr.mxu0 %v1344_v3  ;;  %1192 = vmatprep.subr.mxu1 %v1344_v3  ;;  %p1330_p4 = pnand %p1329_p3, %p1323_p0 }
   0xe   :  { %1186 = vmatpush3.msra.mxu0 %v1417_v7  ;;  %1193 = vmatpush3.msra.mxu1 %v1395_v1 }
   0xf   :  { %1187 = vmatprep.subr.mxu0 %v1344_v3  ;;  %1194 = vmatprep.subr.mxu1 %v1344_v3 }
  0x10   :  { %1188 = vmatpush3.msra.mxu0 %v1427_v9  ;;  %1195 = vmatpush3.msra.mxu1 %v1408_v5 }
  0x11   :  { %1196 = vmatprep.subr.mxu1 %v1344_v3  ;;  %1200 = vmatprep.mubr.msk.f32.mxu1 %vm1345_vm1, %v1344_v3 }
  0x12   :  { %1197 = vmatpush3.msra.mxu1 %v1417_v7  ;;  %1203 = vmatprep.subr.mxu0 %v1344_v3 }
  0x13   :  { %1198 = vmatprep.subr.mxu1 %v1344_v3 }
  0x14   :  { %1199 = vmatpush3.msra.mxu1 %v1427_v9 }
  0x15   :  { %1214 = vmatprep.subr.mxu1 %v1344_v3 }
  0x7a   :  { %v1463_v13 = vpop.permute.xlu0 %211 }
  0xc6   :  { %v1169_v10 = vpop.f32.mrf.mxu0 }
  0xc7   :  { %v1461_v12 = vadd.f32 %v1169_v10, %v1093_v11 }
  0xc8   :  { %v111_v17 = vpop.f32.mrf.mxu0 }
  0xc9   :  { %v1467_v18 = vadd.f32 %v1093_v11, %v111_v17 }
  0xcb   :  { %v195_v14 = vpop.f32.mrf.mxu1 }
  0xcc   :  { %v214_v15 = vadd.f32 %v1463_v13, %v195_v14  ;;  %v199_v19 = vadd.f32 %v195_v14, %v1467_v18 }
  0xcd   :  { %v1180_v16 = vpop.f32.mrf.mxu1 }
  0xce   :  { %216 = vrot.lane.b32.xlu0 %v214_v15, %s1346_s17  ;;  %v1096_v20 = vmul.f32 -1.442695, %v199_v19 }
  0xd0   :  { %1274 = vpow2.f32 %v1096_v20 }
  0xdd   :  { %v1275_v21 = vpop.eup %1274 }
  0xde   :  { %v203_v22 = vadd.f32 1.0, %v1275_v21 }
  0xe0   :  { %1276 = vrcp.f32 %v203_v22 }
  0xed   :  { %v1277_v23 = vpop.eup %1276 }
  0xee   :  { %v226_v29 = vsub.f32 1.0, %v1277_v23  ;;  %v232_v31 = vmul.f32 0.0, %v1277_v23 }
 0x140   :  { %v217_v24 = vpop.permute.xlu0 %216 }
 0x141   :  { %v219_v25 = vmul.f32 %v1277_v23, %v217_v24 }
 0x143   :  { %221 = vrot.lane.b32.xlu1 %v219_v25, %s1346_s17 }
 0x1b5   :  { %v222_v26 = vpop.permute.xlu1 %221 }
 0x1b6   :  { %v224_v27 = vadd.f32 %v222_v26, %v1467_v18 }
 0x1b8   :  { %1278 = vtanh.f32 %v224_v27 }
 0x1c5   :  { %v1279_v28 = vpop.eup %1278 }
 0x1c6   :  { %228 = vrot.lane.b32.xlu1 %v1279_v28, %s1347_s3 }
 0x238   :  { %v229_v30 = vpop.permute.xlu1 %228 }
 0x239   :  { %v231_v32 = vmul.f32 %v229_v30, %v226_v29 }
 0x23b   :  { %v233_v33 = vadd.f32 %v232_v31, %v231_v32 }
 0x23d   :  { %235 = vrot.lane.b32.xlu0 %v233_v33, %s1347_s3  ;;  %v338_v50 = vrot.slane %v233_v33, 6 }
 0x2af   :  { %v236_v34 = vpop.permute.xlu0 %235 }
 0x2b0   :  { %1190 = vmatmul.mubr.msk.f32.vlgmr.msra.gmra.mxu0 %vm125_vm2, %v236_v34 }
 0x2b1   :  { %1204 = vmatpush3.msra.mxu0 %v1395_v1  ;;  %1211 = vmatprep.mubr.msk.f32.mxu0 %vm1345_vm1, %v1344_v3 }
 0x2b2   :  { %1205 = vmatprep.subr.mxu0 %v1344_v3 }
 0x2b3   :  { %1206 = vmatpush3.msra.mxu0 %v1408_v5 }
 0x2b4   :  { %1207 = vmatprep.subr.mxu0 %v1344_v3 }
 0x2b5   :  { %1208 = vmatpush3.msra.mxu0 %v1417_v7 }
 0x2b6   :  { %1209 = vmatprep.subr.mxu0 %v1344_v3 }
 0x2b7   :  { %1210 = vmatpush3.msra.mxu0 %v1427_v9 }
 0x2b8   :  { %1225 = vmatprep.subr.mxu0 %v1344_v3 }
 0x370   :  { %v305_v35 = vpop.f32.mrf.mxu0 }
 0x371   :  { %v319_v36 = vadd.f32 %v305_v35, %v1463_v13  ;;  %v310_v39 = vrot.slane %v305_v35, 6 }
 0x372   :  { %v1191_v37 = vpop.f32.mrf.mxu0 }
 0x373   :  { %v321_v38 = vrot.slane %v319_v36, 6  ;;  %v312_v40 = vadd.f32 %v310_v39, %v1467_v18 }
 0x375   :  { %322 = vrot.lane.b32.xlu1 %v321_v38, %s1346_s17  ;;  %v1099_v41 = vmul.f32 -1.442695, %v312_v40 }
 0x377   :  { %1280 = vpow2.f32 %v1099_v41 }
 0x384   :  { %v1281_v42 = vpop.eup %1280 }
 0x385   :  { %v316_v43 = vadd.f32 1.0, %v1281_v42 }
 0x387   :  { %1282 = vrcp.f32 %v316_v43 }
 0x394   :  { %v1283_v44 = vpop.eup %1282 }
 0x395   :  { %v332_v51 = vsub.f32 1.0, %v1283_v44  ;;  %v340_v54 = vmul.f32 %v1283_v44, %v338_v50 }
 0x3e7   :  { %v323_v45 = vpop.permute.xlu1 %322 }
 0x3e8   :  { %v325_v46 = vmul.f32 %v1283_v44, %v323_v45 }
 0x3ea   :  { %327 = vrot.lane.b32.xlu0 %v325_v46, %s1346_s17 }
 0x45c   :  { %v328_v47 = vpop.permute.xlu0 %327 }
 0x45d   :  { %v330_v48 = vadd.f32 %v328_v47, %v1467_v18 }
 0x45f   :  { %1284 = vtanh.f32 %v330_v48 }
 0x46c   :  { %v1285_v49 = vpop.eup %1284 }
 0x46d   :  { %334 = vrot.lane.b32.xlu1 %v1285_v49, %s1347_s3 }
 0x4df   :  { %v335_v52 = vpop.permute.xlu1 %334 }
 0x4e0   :  { %v337_v53 = vmul.f32 %v335_v52, %v332_v51 }
 0x4e2   :  { %v341_v55 = vadd.f32 %v340_v54, %v337_v53 }
 0x4e4   :  { %v343_v56 = vrot.slane %v341_v55, 2  ;;  %v447_v16 = vrot.slane %v341_v55, 6 }
 0x4e6   :  { %344 = vrot.lane.b32.xlu0 %v343_v56, %s1347_s3 }
 0x558   :  { %v345_v57 = vpop.permute.xlu0 %344 }
 0x559   :  { %1201 = vmatmul.mubr.msk.f32.vlgmr.msra.gmra.mxu1 %vm125_vm2, %v345_v57 }
 0x55a   :  { %1215 = vmatpush3.msra.mxu1 %v1395_v1  ;;  %1222 = vmatprep.mubr.msk.f32.mxu1 %vm1345_vm1, %v1344_v3 }
 0x55b   :  { %1216 = vmatprep.subr.mxu1 %v1344_v3 }
 0x55c   :  { %1217 = vmatpush3.msra.mxu1 %v1408_v5 }
 0x55d   :  { %1218 = vmatprep.subr.mxu1 %v1344_v3 }
 0x55e   :  { %1219 = vmatpush3.msra.mxu1 %v1417_v7 }
 0x55f   :  { %1220 = vmatprep.subr.mxu1 %v1344_v3 }
 0x560   :  { %1221 = vmatpush3.msra.mxu1 %v1427_v9 }
 0x561   :  { %1236 = vmatprep.subr.mxu1 %v1344_v3 }
 0x619   :  { %v414_v58 = vpop.f32.mrf.mxu1 }
 0x61a   :  { %v428_v59 = vadd.f32 %v414_v58, %v1463_v13  ;;  %v419_v62 = vrot.slane %v414_v58, 4 }
 0x61b   :  { %v1202_v60 = vpop.f32.mrf.mxu1 }
 0x61c   :  { %v430_v61 = vrot.slane %v428_v59, 4  ;;  %v421_v63 = vadd.f32 %v419_v62, %v1467_v18 }
 0x61e   :  { %431 = vrot.lane.b32.xlu1 %v430_v61, %s1346_s17  ;;  %v1101_v0 = vmul.f32 -1.442695, %v421_v63 }
 0x620   :  { %1286 = vpow2.f32 %v1101_v0 }
 0x62d   :  { %v1287_v2 = vpop.eup %1286 }
 0x62e   :  { %v425_v4 = vadd.f32 1.0, %v1287_v2 }
 0x630   :  { %1288 = vrcp.f32 %v425_v4 }
 0x63d   :  { %v1289_v6 = vpop.eup %1288 }
 0x63e   :  { %v441_v17 = vsub.f32 1.0, %v1289_v6  ;;  %v449_v20 = vmul.f32 %v1289_v6, %v447_v16 }
 0x690   :  { %v432_v8 = vpop.permute.xlu1 %431 }
 0x691   :  { %v434_v10 = vmul.f32 %v1289_v6, %v432_v8 }
 0x693   :  { %436 = vrot.lane.b32.xlu0 %v434_v10, %s1346_s17 }
 0x705   :  { %v437_v11 = vpop.permute.xlu0 %436 }
 0x706   :  { %v439_v14 = vadd.f32 %v437_v11, %v1467_v18 }
 0x708   :  { %1290 = vtanh.f32 %v439_v14 }
 0x715   :  { %v1291_v15 = vpop.eup %1290 }
 0x716   :  { %443 = vrot.lane.b32.xlu1 %v1291_v15, %s1347_s3 }
 0x788   :  { %v444_v19 = vpop.permute.xlu1 %443 }
 0x789   :  { %v446_v21 = vmul.f32 %v444_v19, %v441_v17 }
 0x78b   :  { %v450_v22 = vadd.f32 %v449_v20, %v446_v21 }
 0x78d   :  { %v452_v23 = vrot.slane %v450_v22, 4  ;;  %v556_v40 = vrot.slane %v450_v22, 6 }
 0x78f   :  { %453 = vrot.lane.b32.xlu0 %v452_v23, %s1347_s3 }
 0x801   :  { %v454_v24 = vpop.permute.xlu0 %453 }
 0x802   :  { %1212 = vmatmul.mubr.msk.f32.vlgmr.msra.gmra.mxu0 %vm125_vm2, %v454_v24 }
 0x803   :  { %1226 = vmatpush3.msra.mxu0 %v1395_v1  ;;  %1233 = vmatprep.mubr.msk.f32.mxu0 %vm1345_vm1, %v1344_v3 }
 0x804   :  { %1227 = vmatprep.subr.mxu0 %v1344_v3 }
 0x805   :  { %1228 = vmatpush3.msra.mxu0 %v1408_v5 }
 0x806   :  { %1229 = vmatprep.subr.mxu0 %v1344_v3 }
 0x807   :  { %1230 = vmatpush3.msra.mxu0 %v1417_v7 }
 0x808   :  { %1231 = vmatprep.subr.mxu0 %v1344_v3 }
 0x809   :  { %1232 = vmatpush3.msra.mxu0 %v1427_v9 }
 0x80a   :  { %1247 = vmatprep.subr.mxu0 %v1344_v3 }
 0x8c2   :  { %v523_v25 = vpop.f32.mrf.mxu0 }
 0x8c3   :  { %v537_v26 = vadd.f32 %v523_v25, %v1463_v13  ;;  %v528_v29 = vrot.slane %v523_v25, 2 }
 0x8c4   :  { %v1213_v27 = vpop.f32.mrf.mxu0 }
 0x8c5   :  { %v539_v28 = vrot.slane %v537_v26, 2  ;;  %v530_v30 = vadd.f32 %v528_v29, %v1467_v18 }
 0x8c7   :  { %540 = vrot.lane.b32.xlu1 %v539_v28, %s1346_s17  ;;  %v1103_v31 = vmul.f32 -1.442695, %v530_v30 }
 0x8c9   :  { %1292 = vpow2.f32 %v1103_v31 }
 0x8d6   :  { %v1293_v32 = vpop.eup %1292 }
 0x8d7   :  { %v534_v33 = vadd.f32 1.0, %v1293_v32 }
 0x8d9   :  { %1294 = vrcp.f32 %v534_v33 }
 0x8e6   :  { %v1295_v34 = vpop.eup %1294 }
 0x8e7   :  { %v550_v41 = vsub.f32 1.0, %v1295_v34  ;;  %v558_v43 = vmul.f32 %v1295_v34, %v556_v40 }
 0x939   :  { %v541_v35 = vpop.permute.xlu1 %540 }
 0x93a   :  { %v543_v36 = vmul.f32 %v1295_v34, %v541_v35 }
 0x93c   :  { %545 = vrot.lane.b32.xlu0 %v543_v36, %s1346_s17 }
 0x9ae   :  { %v546_v37 = vpop.permute.xlu0 %545 }
 0x9af   :  { %v548_v38 = vadd.f32 %v546_v37, %v1467_v18 }
 0x9b1   :  { %1296 = vtanh.f32 %v548_v38 }
 0x9be   :  { %v1297_v39 = vpop.eup %1296 }
 0x9bf   :  { %552 = vrot.lane.b32.xlu1 %v1297_v39, %s1347_s3 }
 0xa31   :  { %v553_v42 = vpop.permute.xlu1 %552 }
 0xa32   :  { %v555_v44 = vmul.f32 %v553_v42, %v550_v41 }
 0xa34   :  { %v559_v45 = vadd.f32 %v558_v43, %v555_v44 }
 0xa36   :  { %v561_v46 = vrot.slane %v559_v45, 6 }
 0xa38   :  { %562 = vrot.lane.b32.xlu0 %v561_v46, %s1347_s3 }
 0xaaa   :  { %v563_v47 = vpop.permute.xlu0 %562 }
 0xaab   :  { %1223 = vmatmul.mubr.msk.f32.vlgmr.msra.gmra.mxu1 %vm125_vm2, %v563_v47 }
 0xaac   :  { %1237 = vmatpush3.msra.mxu1 %v1395_v1  ;;  %1244 = vmatprep.mubr.msk.f32.mxu1 %vm1345_vm1, %v1344_v3 }
 0xaad   :  { %1238 = vmatprep.subr.mxu1 %v1344_v3 }
 0xaae   :  { %1239 = vmatpush3.msra.mxu1 %v1408_v5 }
 0xaaf   :  { %1240 = vmatprep.subr.mxu1 %v1344_v3 }
 0xab0   :  { %1241 = vmatpush3.msra.mxu1 %v1417_v7 }
 0xab1   :  { %1242 = vmatprep.subr.mxu1 %v1344_v3 }
 0xab2   :  { %1243 = vmatpush3.msra.mxu1 %v1427_v9 }
 0xab3   :  { %1258 = vmatprep.subr.mxu1 %v1344_v3 }
 0xb6b   :  { %v632_v18 = vpop.f32.mrf.mxu1 }
 0xb6c   :  { %v643_v48 = vadd.f32 %v632_v18, %v1463_v13  ;;  %v636_v50 = vadd.f32 %v632_v18, %v1461_v12 }
 0xb6d   :  { %v1224_v49 = vpop.f32.mrf.mxu1 }
 0xb6e   :  { %645 = vrot.lane.b32.xlu1 %v643_v48, %s1346_s17  ;;  %v1105_v51 = vmul.f32 -1.442695, %v636_v50 }
 0xb70   :  { %1298 = vpow2.f32 %v1105_v51 }
 0xb7d   :  { %v1299_v52 = vpop.eup %1298 }
 0xb7e   :  { %v640_v53 = vadd.f32 1.0, %v1299_v52 }
 0xb80   :  { %1300 = vrcp.f32 %v640_v53 }
 0xb8d   :  { %v1301_v54 = vpop.eup %1300 }
 0xb8e   :  { %v655_v60 = vsub.f32 1.0, %v1301_v54  ;;  %v662_v62 = vmul.f32 %v1301_v54, %v561_v46 }
 0xbe0   :  { %v646_v55 = vpop.permute.xlu1 %645 }
 0xbe1   :  { %v648_v56 = vmul.f32 %v1301_v54, %v646_v55 }
 0xbe3   :  { %650 = vrot.lane.b32.xlu0 %v648_v56, %s1346_s17 }
 0xc55   :  { %v651_v57 = vpop.permute.xlu0 %650 }
 0xc56   :  { %v653_v58 = vadd.f32 %v651_v57, %v1461_v12 }
 0xc58   :  { %1302 = vtanh.f32 %v653_v58 }
 0xc65   :  { %v1303_v59 = vpop.eup %1302 }
 0xc66   :  { %657 = vrot.lane.b32.xlu1 %v1303_v59, %s1347_s3 }
 0xcd8   :  { %v658_v61 = vpop.permute.xlu1 %657 }
 0xcd9   :  { %v660_v63 = vmul.f32 %v658_v61, %v655_v60 }
 0xcdb   :  { %v663_v0 = vadd.f32 %v662_v62, %v660_v63 }
 0xcdd   :  { %665 = vrot.lane.b32.xlu0 %v663_v0, %s1347_s3  ;;  %v768_v21 = vrot.slane %v663_v0, 6  ;;  %v993_v0 = vld [vmem:[%s1608_s5 + $0x18] sm:$0xff] }
 0xd4f   :  { %v666_v2 = vpop.permute.xlu0 %665 }
 0xd50   :  { %1234 = vmatmul.mubr.msk.f32.vlgmr.msra.gmra.mxu0 %vm125_vm2, %v666_v2  ;;  %v992_v2 = vld [vmem:[%s1608_s5 + $0x10] sm:$0xff] }
 0xd51   :  { %1248 = vmatpush3.msra.mxu0 %v1395_v1  ;;  %1255 = vmatprep.mubr.msk.f32.mxu0 %vm1345_vm1, %v1344_v3 }
 0xd52   :  { %1249 = vmatprep.subr.mxu0 %v1344_v3 }
 0xd53   :  { %1250 = vmatpush3.msra.mxu0 %v1408_v5 }
 0xd54   :  { %1251 = vmatprep.subr.mxu0 %v1344_v3 }
 0xd55   :  { %1252 = vmatpush3.msra.mxu0 %v1417_v7 }
 0xd56   :  { %1253 = vmatprep.subr.mxu0 %v1344_v3 }
 0xd57   :  { %1254 = vmatpush3.msra.mxu0 %v1427_v9 }
 0xe10   :  { %v735_v4 = vpop.f32.mrf.mxu0 }
 0xe11   :  { %v749_v6 = vadd.f32 %v735_v4, %v1463_v13  ;;  %v740_v10 = vrot.slane %v735_v4, 6  ;;  %v991_v4 = vld [vmem:[%s1608_s5 + $0x8] sm:$0xff] }
 0xe12   :  { %v1235_v8 = vpop.f32.mrf.mxu0 }
 0xe13   :  { %v751_v1 = vrot.slane %v749_v6, 6  ;;  %v742_v11 = vadd.f32 %v740_v10, %v1461_v12 }
 0xe15   :  { %752 = vrot.lane.b32.xlu1 %v751_v1, %s1346_s17  ;;  %v1107_v14 = vmul.f32 -1.442695, %v742_v11 }
 0xe17   :  { %1304 = vpow2.f32 %v1107_v14 }
 0xe24   :  { %v1305_v5 = vpop.eup %1304 }
 0xe25   :  { %v746_v15 = vadd.f32 1.0, %v1305_v5 }
 0xe27   :  { %1306 = vrcp.f32 %v746_v15 }
 0xe34   :  { %v1307_v7 = vpop.eup %1306 }
 0xe35   :  { %v762_v22 = vsub.f32 1.0, %v1307_v7  ;;  %v770_v25 = vmul.f32 %v1307_v7, %v768_v21 }
 0xe87   :  { %v753_v16 = vpop.permute.xlu1 %752 }
 0xe88   :  { %v755_v17 = vmul.f32 %v1307_v7, %v753_v16  ;;  %v1112_v16 = vld [vmem:[%s1609_s6] ss:$0 sm:$0xff] }
 0xe8a   :  { %757 = vrot.lane.b32.xlu0 %v755_v17, %s1346_s17 }
 0xefc   :  { %v758_v9 = vpop.permute.xlu0 %757 }
 0xefd   :  { %v760_v19 = vadd.f32 %v758_v9, %v1461_v12 }
 0xeff   :  { %1308 = vtanh.f32 %v760_v19 }
 0xf0c   :  { %v1309_v20 = vpop.eup %1308 }
 0xf0d   :  { %764 = vrot.lane.b32.xlu1 %v1309_v20, %s1347_s3 }
 0xf7f   :  { %v765_v23 = vpop.permute.xlu1 %764 }
 0xf80   :  { %v767_v24 = vmul.f32 %v765_v23, %v762_v22 }
 0xf82   :  { %v771_v26 = vadd.f32 %v770_v25, %v767_v24 }
 0xf84   :  { %v773_v27 = vrot.slane %v771_v26, 2  ;;  %v877_v44 = vrot.slane %v771_v26, 6 }
 0xf86   :  { %774 = vrot.lane.b32.xlu0 %v773_v27, %s1347_s3 }
 0xff8   :  { %v775_v28 = vpop.permute.xlu0 %774 }
 0xff9   :  { %1245 = vmatmul.mubr.msk.f32.vlgmr.msra.gmra.mxu1 %vm125_vm2, %v775_v28 }
 0xffa   :  { %1266 = vmatprep.mubr.msk.f32.mxu1 %vm1345_vm1, %v1344_v3  ;;  %1259 = vmatpush3.msra.mxu1 %v993_v0 }
 0xffb   :  { %1260 = vmatprep.subr.mxu1 %v1344_v3 }
 0xffc   :  { %1261 = vmatpush3.msra.mxu1 %v992_v2 }
 0xffd   :  { %1262 = vmatprep.subr.mxu1 %v1344_v3 }
 0xffe   :  { %1263 = vmatpush3.msra.mxu1 %v991_v4 }
 0xfff   :  { %1264 = vmatprep.subr.mxu1 %v1344_v3 }
0x10b9   :  { %v844_v29 = vpop.f32.mrf.mxu1 }
0x10ba   :  { %v858_v30 = vadd.f32 %v844_v29, %v1463_v13  ;;  %v849_v33 = vrot.slane %v844_v29, 4 }
0x10bb   :  { %v1246_v31 = vpop.f32.mrf.mxu1 }
0x10bc   :  { %v860_v32 = vrot.slane %v858_v30, 4  ;;  %v851_v34 = vadd.f32 %v849_v33, %v1461_v12 }
0x10be   :  { %861 = vrot.lane.b32.xlu1 %v860_v32, %s1346_s17  ;;  %v1109_v35 = vmul.f32 -1.442695, %v851_v34 }
0x10c0   :  { %1310 = vpow2.f32 %v1109_v35 }
0x10cd   :  { %v1311_v36 = vpop.eup %1310 }
0x10ce   :  { %v855_v37 = vadd.f32 1.0, %v1311_v36 }
0x10d0   :  { %1312 = vrcp.f32 %v855_v37 }
0x10dd   :  { %v1313_v38 = vpop.eup %1312 }
0x10de   :  { %v871_v45 = vsub.f32 1.0, %v1313_v38  ;;  %v879_v47 = vmul.f32 %v1313_v38, %v877_v44 }
0x1130   :  { %v862_v39 = vpop.permute.xlu1 %861 }
0x1131   :  { %v864_v40 = vmul.f32 %v1313_v38, %v862_v39 }
0x1133   :  { %866 = vrot.lane.b32.xlu0 %v864_v40, %s1346_s17 }
0x11a5   :  { %v867_v41 = vpop.permute.xlu0 %866 }
0x11a6   :  { %v869_v42 = vadd.f32 %v867_v41, %v1461_v12 }
0x11a8   :  { %1314 = vtanh.f32 %v869_v42 }
0x11b5   :  { %v1315_v43 = vpop.eup %1314 }
0x11b6   :  { %873 = vrot.lane.b32.xlu1 %v1315_v43, %s1347_s3 }
0x1228   :  { %v874_v46 = vpop.permute.xlu1 %873 }
0x1229   :  { %v876_v18 = vmul.f32 %v874_v46, %v871_v45 }
0x122b   :  { %v880_v48 = vadd.f32 %v879_v47, %v876_v18 }
0x122d   :  { %v882_v49 = vrot.slane %v880_v48, 4  ;;  %v986_v8 = vrot.slane %v880_v48, 6 }
0x122f   :  { %883 = vrot.lane.b32.xlu0 %v882_v49, %s1347_s3 }
0x12a1   :  { %v884_v50 = vpop.permute.xlu0 %883 }
0x12a2   :  { %1256 = vmatmul.mubr.msk.f32.vlgmr.msra.gmra.mxu0 %vm125_vm2, %v884_v50 }
0x1362   :  { %v953_v51 = vpop.f32.mrf.mxu0 }
0x1363   :  { %v967_v52 = vadd.f32 %v953_v51, %v1463_v13  ;;  %v958_v55 = vrot.slane %v953_v51, 2 }
0x1364   :  { %v1257_v53 = vpop.f32.mrf.mxu0 }
0x1365   :  { %v969_v54 = vrot.slane %v967_v52, 2  ;;  %v960_v56 = vadd.f32 %v958_v55, %v1461_v12 }
0x1367   :  { %970 = vrot.lane.b32.xlu1 %v969_v54, %s1346_s17  ;;  %v1111_v57 = vmul.f32 -1.442695, %v960_v56 }
0x1369   :  { %1316 = vpow2.f32 %v1111_v57 }
0x1376   :  { %v1317_v58 = vpop.eup %1316 }
0x1377   :  { %v964_v59 = vadd.f32 1.0, %v1317_v58 }
0x1379   :  { %1318 = vrcp.f32 %v964_v59 }
0x1386   :  { %v1319_v60 = vpop.eup %1318 }
0x1387   :  { %v980_v1 = vsub.f32 1.0, %v1319_v60  ;;  %v988_v11 = vmul.f32 %v1319_v60, %v986_v8 }
0x13d9   :  { %v971_v61 = vpop.permute.xlu1 %970 }
0x13da   :  { %v973_v62 = vmul.f32 %v1319_v60, %v971_v61 }
0x13dc   :  { %975 = vrot.lane.b32.xlu0 %v973_v62, %s1346_s17 }
0x144e   :  { %v976_v63 = vpop.permute.xlu0 %975 }
0x144f   :  { %v978_v13 = vadd.f32 %v976_v63, %v1461_v12  ;;  %v990_v12 = vld [vmem:[%s1608_s5] sm:$0xff] }
0x1450   :  { %1265 = vmatpush3.msra.mxu1 %v990_v12 }
0x1451   :  { %1320 = vtanh.f32 %v978_v13 }
0x145e   :  { %v1321_v6 = vpop.eup %1320 }
0x145f   :  { %982 = vrot.lane.b32.xlu1 %v1321_v6, %s1347_s3 }
0x14d1   :  { %v983_v10 = vpop.permute.xlu1 %982 }
0x14d2   :  { %v985_v14 = vmul.f32 %v983_v10, %v980_v1 }
0x14d4   :  { %v989_v5 = vadd.f32 %v988_v11, %v985_v14 }
0x14d6   :  { %v1002_v15 = vrot.slane %v989_v5, 6 }
0x14d8   :  { %1003 = vrot.lane.b32.xlu0 %v1002_v15, %s1347_s3 }
0x154a   :  { %v1004_v7 = vpop.permute.xlu0 %1003 }
0x154b   :  { %1267 = vmatmul.mubr.msk.f32.vlgmr.msra.gmra.mxu1 %vm125_vm2, %v1004_v7 }
0x160b   :  { %v1073_v3 = vpop.f32.mrf.mxu1 }
0x160c   :  { %v1074_v17 = vadd.f32 %v1112_v16, %v1073_v3 }
0x160d   :  { %v1268_v9 = vpop.f32.mrf.mxu1 }
0x160e   :  { %1078 = vst.msk [vmem:[#allocation2] sm:$0x3] %vm1077_vm3, %v1074_v17 }
0x160f   :  { %1333 = shalt.err (!%p1330_p4)
}
0x1610   :  { %1088 = dma.vmem_to_hbm [thread:$0]  %s1086_s28, 32, %s1610_s7, [#allocation3]  }
0x1611   :  { %1342 = dma.done.wait [#allocation3], 32  }
0x1612   :  { %1343 = vsyncadd [#allocation3], 4294967264 }
0x1613   :  { %1092 = vsyncpa [#allocation3], 1 }

</bundles_post_ra>
